<compile_context>
chip_gen: v7x
topology: tpu7x:2x2x1
jax: 0.10.0
libtpu: 0.0.40
codegen_flags: <defaults>
</compile_context>

<pallas_src>
import functools

import jax
import jax.numpy as jnp
import numpy as np
from jax.experimental import pallas as pl
from jax.experimental.pallas import tpu as pltpu

LANE = 128


def _soft_iou_kernel(x_ref, t_ref, inter_ref, pu_ref, *,
                     n_classes, hw, t_rows, sblocks_per_split, need_mask):
    """Accumulate per-class partials for one (sample, spatial-split).

    x_ref:     (1, C, T, 128) logits tile (native dtype)
    t_ref:     (1, 1, T, 128) integer labels tile (native dtype)
    inter_ref: (1, 1, C, 128) f32 resident accumulator: sum(pred * onehot)
    pu_ref:    (1, 1, C, 128) f32 resident accumulator: sum(pred) + sum(onehot)
    """
    s = pl.program_id(2)

    @pl.when(s == 0)
    def _():
        inter_ref[...] = jnp.zeros_like(inter_ref)
        pu_ref[...] = jnp.zeros_like(pu_ref)

    x = x_ref[0]                                  # (C, T, 128) native dtype
    labels = t_ref[0].astype(jnp.int32)           # (1, T, 128)

    # Channel softmax.  The class axis is the leading (looped) dim, so max /
    # sum over it is plain elementwise VPU work.  Pre-exp math stays in the
    # input dtype for 16-bit floats (bf16 VPU on v6e/v7x); feed f32 on v5e.
    if jnp.issubdtype(x.dtype, jnp.floating) and x.dtype.itemsize == 2:
        m = jnp.max(x, axis=0, keepdims=True)
        z = (x - m).astype(jnp.float32)
    else:
        xf = x.astype(jnp.float32)
        z = xf - jnp.max(xf, axis=0, keepdims=True)
    e = jnp.exp(z)                                # (C, T, 128) f32
    # Exact divide for the denominator (kernel is HBM-bound -> it is free).
    pred = e / jnp.sum(e, axis=0, keepdims=True)  # (C, T, 128) f32

    if need_mask:
        # Ragged edge block / lane padding: positions >= hw contribute nothing.
        # The same predicate masks pred (sum_pred, inter) and the labels
        # (one-hot count), so unspecified out-of-bounds data is inert.
        p = pl.program_id(1)
        row = jax.lax.broadcasted_iota(jnp.int32, (1, t_rows, LANE), 1)
        lane = jax.lax.broadcasted_iota(jnp.int32, (1, t_rows, LANE), 2)
        pos = ((p * sblocks_per_split + s) * t_rows + row) * LANE + lane
        valid = pos < hw
        pred = jnp.where(valid, pred, 0.0)
        labels = jnp.where(valid, labels, n_classes)   # matches no class

    # One-hot never materialized: one broadcasted compare feeds both the
    # `inter` select and the one-hot count.
    cls_ids = jax.lax.broadcasted_iota(jnp.int32, (n_classes, 1, LANE), 0)
    match = labels == cls_ids                     # (C, T, 128) bool

    inter_ref[0, 0] += jnp.sum(jnp.where(match, pred, 0.0), axis=1)
    pu_ref[0, 0] += (jnp.sum(pred, axis=1) +
                     jnp.sum(match.astype(jnp.float32), axis=1))


def _pick_block_rows(n_classes, s_rows, x_itemsize, t_itemsize,
                     vmem_limit_bytes, max_block_rows):
    """Largest spatial tile (in 128-lane rows) that fits the VMEM budget."""
    # Per-row working-set estimate:
    #   double-buffered input blocks: 2 * (C*x_item + t_item) * 128 bytes
    #   ~5 live f32 (C, row, 128) intermediates (e, pred, masked pred,
    #   inter select, match cast):    5 * C * 4 * 128 bytes
    per_row = LANE * (2 * (n_classes * x_itemsize + t_itemsize)
                      + 5 * n_classes * 4)
    budget = int(0.55 * vmem_limit_bytes)
    t_rows = max(8, budget // per_row)
    # Sublane packing alignment: 8 (f32/i32), 16 (bf16/f16), 32 (int8) rows.
    align = 8 * max(1, 4 // x_itemsize, 4 // t_itemsize)
    t_rows = max(align, (t_rows // align) * align)
    t_rows = min(t_rows, 2048)
    if max_block_rows is not None:
        t_rows = min(t_rows, max(align, (max_block_rows // align) * align))
    if s_rows <= t_rows:
        return s_rows            # single full-extent spatial block (legal)
    return t_rows


def soft_iou_loss(logits, target, n_classes, *,
                  vmem_limit_bytes=48 * 1024 * 1024,
                  max_block_rows=None,
                  spatial_splits=None):
    """SoftIoULoss forward.

    logits: (N, C, H, W) float (f32 or bf16 -- consumed in native dtype).
    target: (N, H, W) integer class labels (int32/int8/uint8 all fine).
    """
    N, C, H, W = logits.shape
    assert C == n_classes
    HW = H * W
    S = pl.cdiv(HW, LANE)
    HW_lane = S * LANE

    x = logits.reshape(N, C, HW)
    t = target.reshape(N, 1, HW)
    if HW_lane != HW:
        # Pad only to the next lane multiple (<= 127 elems per row); the
        # padded tail is masked inside the kernel.
        x = jnp.pad(x, ((0, 0), (0, 0), (0, HW_lane - HW)))
        t = jnp.pad(t, ((0, 0), (0, 0), (0, HW_lane - HW)))
    x = x.reshape(N, C, S, LANE)
    t = t.reshape(N, 1, S, LANE)

    T = _pick_block_rows(C, S, x.dtype.itemsize, t.dtype.itemsize,
                         vmem_limit_bytes, max_block_rows)
    n_sblocks = pl.cdiv(S, T)

    if spatial_splits is None:
        # v7x has 2 TensorCores: when the batch axis alone cannot balance them
        # (odd N), split the spatial reduction 2-way into a parallel axis.
        P = 2 if (N % 2 == 1 and n_sblocks >= 2) else 1
    else:
        P = spatial_splits
    SB = pl.cdiv(n_sblocks, P)

    # Mask needed whenever the covered rows exceed the true spatial extent
    # (lane pad, ragged last block, or an uneven P split).
    need_mask = (P * SB * T * LANE) != HW

    if P == 1:
        sp_idx = lambda n, p, s: (n, 0, s, 0)
    else:
        last = n_sblocks - 1
        # Clamp so the DMA never targets a fully out-of-bounds block; the
        # kernel's pos-mask (which uses the *unclamped* logical index) zeroes
        # any duplicated contribution.
        sp_idx = lambda n, p, s: (n, 0, jnp.minimum(p * SB + s, last), 0)

    kernel = functools.partial(
        _soft_iou_kernel, n_classes=n_classes, hw=HW, t_rows=T,
        sblocks_per_split=SB, need_mask=need_mask)

    acc_spec = pl.BlockSpec((1, 1, C, LANE), lambda n, p, s: (n, p, 0, 0))
    inter_out, pu_out = pl.pallas_call(
        kernel,
        out_shape=(jax.ShapeDtypeStruct((N, P, C, LANE), jnp.float32),
                   jax.ShapeDtypeStruct((N, P, C, LANE), jnp.float32)),
        grid=(N, P, SB),
        in_specs=[
            pl.BlockSpec((1, C, T, LANE), sp_idx),
            pl.BlockSpec((1, 1, T, LANE), sp_idx),
        ],
        out_specs=(acc_spec, acc_spec),
        compiler_params=pltpu.CompilerParams(
            dimension_semantics=("parallel", "parallel", "arbitrary"),
            vmem_limit_bytes=vmem_limit_bytes),
    )(x, t)

    # Tiny finalize in plain XLA: lane reduce, combine splits, ratio, mean.
    inter = jnp.sum(inter_out, axis=(1, 3))          # (N, C)
    pu = jnp.sum(pu_out, axis=(1, 3))                # (N, C)
    union = pu - inter                               # pred + onehot - pred*onehot
    return -jnp.mean(inter / (union + 1e-16))


def soft_iou_loss_ref(logits, target, n_classes):
    """Pure-JAX reference mirroring the PyTorch forward."""
    N = logits.shape[0]
    pred = jax.nn.softmax(logits.astype(jnp.float32), axis=1)
    onehot = jax.nn.one_hot(target, n_classes, axis=1, dtype=jnp.float32)
    inter = (pred * onehot).reshape(N, n_classes, -1).sum(2)
    union = (pred + onehot - pred * onehot).reshape(N, n_classes, -1).sum(2)
    return -jnp.mean(inter / (union + 1e-16))


if __name__ == "__main__":
    key = jax.random.PRNGKey(0)

    # Case 1: canonical small shape -- batch=2, n_classes=4, 16x16 spatial.
    k1, k2, key = jax.random.split(key, 3)
    logits = jax.random.normal(k1, (2, 4, 16, 16), dtype=jnp.float32)
    target = jax.random.randint(k2, (2, 16, 16), 0, 4, dtype=jnp.int32)
    loss = soft_iou_loss(logits, target, 4)
    jax.block_until_ready(loss)
    ref = soft_iou_loss_ref(logits, target, 4)
    np.testing.assert_allclose(np.asarray(loss), np.asarray(ref),
                               rtol=1e-4, atol=1e-6)

    # Case 2: HW not a multiple of 128, forced small tile -> multi-block
    # reduction with a ragged last block, odd batch -> 2-way parallel spatial
    # split (v7x megacore path) with a clamped edge block.  Exercises the
    # in-kernel `pos < hw` mask on both pred and labels.
    k1, k2, key = jax.random.split(key, 3)
    logits2 = jax.random.normal(k1, (1, 3, 50, 50), dtype=jnp.float32)
    target2 = jax.random.randint(k2, (1, 50, 50), 0, 3, dtype=jnp.int32)
    loss2 = soft_iou_loss(logits2, target2, 3, max_block_rows=8)
    jax.block_until_ready(loss2)
    ref2 = soft_iou_loss_ref(logits2, target2, 3)
    np.testing.assert_allclose(np.asarray(loss2), np.asarray(ref2),
                               rtol=1e-4, atol=1e-6)

    # Case 3: bf16 logits (pre-exp max/sub in bf16, widened at exp).
    k1, k2, key = jax.random.split(key, 3)
    logits3 = jax.random.normal(k1, (3, 4, 16, 16), dtype=jnp.bfloat16)
    target3 = jax.random.randint(k2, (3, 16, 16), 0, 4, dtype=jnp.int32)
    loss3 = soft_iou_loss(logits3, target3, 4)
    jax.block_until_ready(loss3)
    ref3 = soft_iou_loss_ref(logits3, target3, 4)
    np.testing.assert_allclose(np.asarray(loss3), np.asarray(ref3),
                               rtol=5e-2, atol=2e-3)

    print("KERNEL_OK")
</pallas_src>

<mosaic_0001>
module attributes {stable_mosaic.version = 11 : i64} {
  func.func @_soft_iou_kernel(%arg0: i32, %arg1: i32, %arg2: i32, %arg3: memref<1x4x2x128xf32, #tpu.memory_space<vmem>>, %arg4: memref<1x1x2x128xi32, #tpu.memory_space<vmem>>, %arg5: memref<1x1x4x128xf32, #tpu.memory_space<vmem>>, %arg6: memref<1x1x4x128xf32, #tpu.memory_space<vmem>>) attributes {dimension_semantics = [#tpu.dimension_semantics<parallel>, #tpu.dimension_semantics<parallel>, #tpu.dimension_semantics<arbitrary>], iteration_bounds = array<i64: 2, 1, 1>, scalar_prefetch = 0 : i64, scratch_operands = 0 : i64, tpu.core_type = #tpu.core_type<tc>, window_params = [{transform_indices = @transform_0, window_bounds = array<i64: 1, 4, 2, 128>}, {transform_indices = @transform_1, window_bounds = array<i64: 1, 1, 2, 128>}, {transform_indices = @transform_2, window_bounds = array<i64: 1, 1, 4, 128>}, {transform_indices = @transform_3, window_bounds = array<i64: 1, 1, 4, 128>}]} {
    %c0_i32 = arith.constant 0 : i32
    %0 = arith.cmpi eq, %arg2, %c0_i32 : i32
    %1 = arith.extui %0 : i1 to i32
    %c0_i32_0 = arith.constant 0 : i32
    %2 = arith.cmpi ne, %1, %c0_i32_0 : i32
    scf.if %2 {
      %cst_29 = arith.constant 0.000000e+00 : f32
      %40 = vector.broadcast %cst_29 : f32 to vector<1x1x4x128xf32>
      %c0_30 = arith.constant 0 : index
      %c0_31 = arith.constant 0 : index
      %c0_32 = arith.constant 0 : index
      %c0_33 = arith.constant 0 : index
      %41 = vector.load %arg5[%c0_30, %c0_31, %c0_32, %c0_33] : memref<1x1x4x128xf32, #tpu.memory_space<vmem>>, vector<1x1x4x128xf32>
      tpu.vector_store %arg5[%c0_30, %c0_31, %c0_32, %c0_33], %40 {strides = array<i32>} : memref<1x1x4x128xf32, #tpu.memory_space<vmem>>, vector<1x1x4x128xf32>,
      %cst_34 = arith.constant 0.000000e+00 : f32
      %42 = vector.broadcast %cst_34 : f32 to vector<1x1x4x128xf32>
      %c0_35 = arith.constant 0 : index
      %c0_36 = arith.constant 0 : index
      %c0_37 = arith.constant 0 : index
      %c0_38 = arith.constant 0 : index
      %43 = vector.load %arg6[%c0_35, %c0_36, %c0_37, %c0_38] : memref<1x1x4x128xf32, #tpu.memory_space<vmem>>, vector<1x1x4x128xf32>
      tpu.vector_store %arg6[%c0_35, %c0_36, %c0_37, %c0_38], %42 {strides = array<i32>} : memref<1x1x4x128xf32, #tpu.memory_space<vmem>>, vector<1x1x4x128xf32>,
    } else {
    }
    %c0 = arith.constant 0 : index
    %c0_1 = arith.constant 0 : index
    %c0_2 = arith.constant 0 : index
    %c0_3 = arith.constant 0 : index
    %3 = vector.load %arg3[%c0, %c0_1, %c0_2, %c0_3] : memref<1x4x2x128xf32, #tpu.memory_space<vmem>>, vector<1x4x2x128xf32>
    %4 = vector.shape_cast %3 : vector<1x4x2x128xf32> to vector<4x2x128xf32>
    %c0_4 = arith.constant 0 : index
    %c0_5 = arith.constant 0 : index
    %c0_6 = arith.constant 0 : index
    %c0_7 = arith.constant 0 : index
    %5 = vector.load %arg4[%c0_4, %c0_5, %c0_6, %c0_7] : memref<1x1x2x128xi32, #tpu.memory_space<vmem>>, vector<1x1x2x128xi32>
    %6 = vector.shape_cast %5 : vector<1x1x2x128xi32> to vector<1x2x128xi32>
    %cst = arith.constant dense<0xFF800000> : vector<2x128xf32>
    %7 = vector.multi_reduction <maximumf>, %4, %cst [0] : vector<4x2x128xf32> to vector<2x128xf32>
    %8 = vector.shape_cast %7 : vector<2x128xf32> to vector<1x2x128xf32>
    %9 = vector.broadcast %8 : vector<1x2x128xf32> to vector<4x2x128xf32>
    %10 = arith.subf %4, %9 : vector<4x2x128xf32>
    %11 = math.exp %10 : vector<4x2x128xf32>
    %cst_8 = arith.constant dense<0.000000e+00> : vector<2x128xf32>
    %12 = vector.multi_reduction <add>, %11, %cst_8 [0] : vector<4x2x128xf32> to vector<2x128xf32>
    %13 = vector.shape_cast %12 : vector<2x128xf32> to vector<1x2x128xf32>
    %14 = vector.broadcast %13 : vector<1x2x128xf32> to vector<4x2x128xf32>
    %15 = arith.divf %11, %14 : vector<4x2x128xf32>
    %16 = tpu.iota {dimensions = array<i32: 0>} : vector<4x1x128xi32>
    %17 = vector.broadcast %6 : vector<1x2x128xi32> to vector<4x2x128xi32>
    %18 = vector.broadcast %16 : vector<4x1x128xi32> to vector<4x2x128xi32>
    %19 = arith.cmpi eq, %17, %18 : vector<4x2x128xi32>
    %c0_9 = arith.constant 0 : index
    %c0_10 = arith.constant 0 : index
    %c0_11 = arith.constant 0 : index
    %c0_12 = arith.constant 0 : index
    %20 = vector.load %arg5[%c0_9, %c0_10, %c0_11, %c0_12] : memref<1x1x4x128xf32, #tpu.memory_space<vmem>>, vector<1x1x4x128xf32>
    %21 = vector.shape_cast %20 : vector<1x1x4x128xf32> to vector<4x128xf32>
    %cst_13 = arith.constant 0.000000e+00 : f32
    %22 = vector.broadcast %cst_13 : f32 to vector<4x2x128xf32>
    %23 = arith.select %19, %15, %22 : vector<4x2x128xi1>, vector<4x2x128xf32>
    %cst_14 = arith.constant dense<0.000000e+00> : vector<4x128xf32>
    %24 = vector.multi_reduction <add>, %23, %cst_14 [1] : vector<4x2x128xf32> to vector<4x128xf32>
    %25 = arith.addf %21, %24 : vector<4x128xf32>
    %c0_15 = arith.constant 0 : index
    %c0_16 = arith.constant 0 : index
    %c0_17 = arith.constant 0 : index
    %c0_18 = arith.constant 0 : index
    %26 = vector.load %arg5[%c0_15, %c0_16, %c0_17, %c0_18] : memref<1x1x4x128xf32, #tpu.memory_space<vmem>>, vector<1x1x4x128xf32>
    %27 = vector.shape_cast %26 : vector<1x1x4x128xf32> to vector<4x128xf32>
    %28 = vector.shape_cast %25 : vector<4x128xf32> to vector<1x1x4x128xf32>
    tpu.vector_store %arg5[%c0_15, %c0_16, %c0_17, %c0_18], %28 {strides = array<i32>} : memref<1x1x4x128xf32, #tpu.memory_space<vmem>>, vector<1x1x4x128xf32>,
    %c0_19 = arith.constant 0 : index
    %c0_20 = arith.constant 0 : index
    %c0_21 = arith.constant 0 : index
    %c0_22 = arith.constant 0 : index
    %29 = vector.load %arg6[%c0_19, %c0_20, %c0_21, %c0_22] : memref<1x1x4x128xf32, #tpu.memory_space<vmem>>, vector<1x1x4x128xf32>
    %30 = vector.shape_cast %29 : vector<1x1x4x128xf32> to vector<4x128xf32>
    %cst_23 = arith.constant dense<0.000000e+00> : vector<4x128xf32>
    %31 = vector.multi_reduction <add>, %15, %cst_23 [1] : vector<4x2x128xf32> to vector<4x128xf32>
    %32 = arith.extui %19 : vector<4x2x128xi1> to vector<4x2x128xi32>
    %33 = arith.sitofp %32 : vector<4x2x128xi32> to vector<4x2x128xf32>
    %cst_24 = arith.constant dense<0.000000e+00> : vector<4x128xf32>
    %34 = vector.multi_reduction <add>, %33, %cst_24 [1] : vector<4x2x128xf32> to vector<4x128xf32>
    %35 = arith.addf %31, %34 : vector<4x128xf32>
    %36 = arith.addf %30, %35 : vector<4x128xf32>
    %c0_25 = arith.constant 0 : index
    %c0_26 = arith.constant 0 : index
    %c0_27 = arith.constant 0 : index
    %c0_28 = arith.constant 0 : index
    %37 = vector.load %arg6[%c0_25, %c0_26, %c0_27, %c0_28] : memref<1x1x4x128xf32, #tpu.memory_space<vmem>>, vector<1x1x4x128xf32>
    %38 = vector.shape_cast %37 : vector<1x1x4x128xf32> to vector<4x128xf32>
    %39 = vector.shape_cast %36 : vector<4x128xf32> to vector<1x1x4x128xf32>
    tpu.vector_store %arg6[%c0_25, %c0_26, %c0_27, %c0_28], %39 {strides = array<i32>} : memref<1x1x4x128xf32, #tpu.memory_space<vmem>>, vector<1x1x4x128xf32>,
    return
  }
  func.func @transform_0(%arg0: i32, %arg1: i32, %arg2: i32) -> (i32, i32, i32, i32) {
    %c0_i32 = arith.constant 0 : i32
    %c0_i32_0 = arith.constant 0 : i32
    %c0_i32_1 = arith.constant 0 : i32
    return %arg0, %c0_i32, %arg2, %c0_i32_0 : i32, i32, i32, i32
  }
  func.func @transform_1(%arg0: i32, %arg1: i32, %arg2: i32) -> (i32, i32, i32, i32) {
    %c0_i32 = arith.constant 0 : i32
    %c0_i32_0 = arith.constant 0 : i32
    %c0_i32_1 = arith.constant 0 : i32
    return %arg0, %c0_i32, %arg2, %c0_i32_0 : i32, i32, i32, i32
  }
  func.func @transform_2(%arg0: i32, %arg1: i32, %arg2: i32) -> (i32, i32, i32, i32) {
    %c0_i32 = arith.constant 0 : i32
    %c0_i32_0 = arith.constant 0 : i32
    %c0_i32_1 = arith.constant 0 : i32
    return %arg0, %arg1, %c0_i32, %c0_i32_0 : i32, i32, i32, i32
  }
  func.func @transform_3(%arg0: i32, %arg1: i32, %arg2: i32) -> (i32, i32, i32, i32) {
    %c0_i32 = arith.constant 0 : i32
    %c0_i32_0 = arith.constant 0 : i32
    %c0_i32_1 = arith.constant 0 : i32
    return %arg0, %arg1, %c0_i32, %c0_i32_0 : i32, i32, i32, i32
  }
}

</mosaic_0001>

<bundles_post_ra>
// kernel: tpu_custom_call.1
= control target key start
LH: loop header
LB: loop body
LE: loop exit
PB: predicated region body
PF: predicated region fallthrough
CT: control target
= control target key end

     0   :  { %9 = vsyncpa [#allocation3], 0  ;;  %s1253_s0 = inlined_call_operand.hbm [shape: f32[2,4,2,128], index: 0, kind: input, shape index: {}]   ;;  %s1254_s1 = inlined_call_operand.hbm [shape: s32[2,1,2,128], index: 1, kind: input, shape index: {}]   ;;  %s1255_s2 = inlined_call_operand.hbm [shape: f32[2,1,4,128], index: 2, kind: output, shape index: {0}]   ;;  %s1256_s3 = inlined_call_operand.hbm [shape: f32[2,1,4,128], index: 3, kind: output, shape index: {1}]  }
   0x1   :  { %11 = vsyncpa [#allocation3 + $0x1], 0 }
   0x2   :  { %12 = vsyncpa [#allocation6], 0 }
   0x3   :  { %14 = vsyncpa [#allocation6 + $0x1], 0 }
   0x4   :  { %15 = vsyncpa [#allocation4], 0 }
   0x5   :  { %17 = vsyncpa [#allocation4 + $0x1], 0 }
   0x6   :  { %18 = vsyncpa [#allocation9], 0 }
   0x7   :  { %20 = vsyncpa [#allocation9 + $0x1], 0  ;;  %s930_s12 = smov 0   ;;  %s932_s13 = smov 0  }
   0x8   :  { %s934_s14 = smov 0   ;;  %s936_s15 = smov 0  }
   0x9   :  { %s938_s16 = smov 0   ;;  %s940_s17 = smov 0  }
   0xa LB: > { %s613_s18 = sadd.s32 4294967295, %s901_s17   ;;  %s614_s19 = sadd.s32 4294967294, %s901_s17   ;;  %s901_s17 = sphi %s940_s17, %s26_s17   ;;  %s897_s16 = sphi %s938_s16, %s1275_s16   ;;  %s893_s15 = sphi %s936_s15, %s1274_s15   ;;  %s889_s14 = sphi %s934_s14, %s1273_s14   ;;  %s885_s13 = sphi %s932_s13, %s1272_s13   ;;  %s881_s12 = sphi %s930_s12, %s1271_s12  }
   0xb   : > { %s45_s20 = sadd.s32 1, %s897_s16  ;;  %s54_s21 = sadd.s32 1, %s889_s14 }
   0xc   : > { %p47_p0 = scmp.ge.s32.totalorder %s45_s20, 2  ;;  %p61_p1 = scmp.ne.s32.totalorder %s889_s14, %s885_s13 }
   0xd   : > { %p62_p2 = scmp.eq.s32.totalorder %s901_s17, 0  ;;  %p67_p3 = scmp.ne.s32.totalorder %s885_s13, %s881_s12 }
   0xe   : > { %s1277_s20 = smov (%p47_p0, %s45_s20), 0  ;;  %p68_p5 = scmp.eq.s32.totalorder %s613_s18, 0 }
   0xf   : > { %p971_p4 = por %p62_p2, %p61_p1  ;;  %s49_s23 = ssub.s32 %s897_s16, %s1277_s20 }
  0x10   : > { %p121_p6 = scmp.eq.s32.totalorder %s613_s18, 1  ;;  %p52_p7 = scmp.eq.s32.totalorder %s49_s23, 0 }
  0x11   : > { %p977_p8 = por %p68_p5, %p67_p3  ;;  %p127_p10 = scmp.eq.s32.totalorder %s614_s19, 1 }
  0x12   : > { %p981_p9 = por %p121_p6, %p61_p1  ;;  %p660_p13 = scmp.lt.s32.totalorder %s901_s17, 2 }
  0x13   : > { %s1260_s24 = scalar_select %p977_p8, 1, 0 }
  0x14   : > { %s1261_s25 = scalar_select %p981_p9, 1, 0 }
  0x15   : > { %s986_s26 = scalar_select %p52_p7, %s889_s14, %s54_s21  }
  0x16   : > { %p988_p11 = por %p127_p10, %p67_p3  ;;  %s995_s28 = sand.u32 1, %s889_s14  }
  0x17   : > { %s617_s29 = sshll.u32 %s995_s28, 3  ;;  %s637_s30 = sshll.u32 %s897_s16, 7 }
  0x18   : > { %s1262_s27 = scalar_select %p988_p11, 1, 0 }
  0x19   : > { %s1002_s6 = scalar_lea.hbm %s1253_s0, %s637_s30  ;;  %s179_s7 = scalar_lea.vmem [#allocation2], %s617_s29 }
  0x1a   : > { %s187_s8 = sshll.u32 %s179_s7, 4  ;;  %p1008_p0 = pnand %p660_p13, %p971_p4  ;;  %s1004_s8 = int_to_ptr.vmem [resolvable:$true] %s187_s8 }
  0x1b   : > { %s176_s10 = scalar_lea.sflag [#allocation3], %s995_s28  ;;  %s723_s11 = scalar_lea.hbm %s1002_s6, 128 }
  0x1c   : > { %p724_p2 = scmp.ne.s32.totalorder %s1002_s6, %s723_s11  ;;  %p725_p3 = pneg %p1008_p0 }
  0x1d   : > { %s728_s21 = scalar_lea.hbm %s1253_s0, 256  ;;  %p729_p4 = scmp.lt.u32.totalorder %s1002_s6, %s1253_s0 }
  0x1e   : > { %p726_p5 = pnand %p725_p3, %p724_p2  ;;  %p730_p7 = scmp.lt.u32.totalorder %s728_s21, %s723_s11 }
  0x1f   : > { %p732_p13 = scmp.lt.u32.totalorder %s723_s11, %s1002_s6 }
  0x20   : > { %p727_p6 = pneg %p726_p5  ;;  %p731_p10 = por %p730_p7, %p729_p4 }
  0x22   : > { %p733_p12 = por %p732_p13, %p731_p10 }
  0x24   : > { %p734_p1 = pnand %p733_p12, %p727_p6 }
  0x26   : > { %737 = shalt.err (!%p734_p1)
}
  0x27   : > { %s738_s29 = scalar_lea.vmem %s1004_s8, 128  ;;  %s903_s30 = smov [#allocation2]  }
  0x28   : > { %p739_p2 = scmp.ne.s32.totalorder %s1004_s8, %s738_s29  ;;  %s743_s4 = sshll.u32 %s903_s30, 4  ;;  %s744_s4 = int_to_ptr.vmem [resolvable:$false] %s743_s4 }
  0x29   : > { %s745_s5 = scalar_lea.vmem %s744_s4, 256  ;;  %p746_p9 = scmp.lt.s32.totalorder %s1004_s8, %s744_s4 }
  0x2a   : > { %p741_p5 = pnand %p739_p2, %p725_p3  ;;  %p747_p4 = scmp.lt.s32.totalorder %s745_s5, %s738_s29 }
  0x2c   : > { %p742_p11 = pneg %p741_p5  ;;  %p748_p7 = por %p747_p4, %p746_p9 }
  0x2e   : > { %p749_p10 = pnand %p748_p7, %p742_p11 }
  0x30   : > { %752 = shalt.err (!%p749_p10)
}
  0x31   : > { %s904_s7 = smov 32   ;;  %s905_s11 = smov 2  }
  0x32   : > { %649 = dma.hbm_to_vmem [thread:$0]  (!%p1008_p0), %s1002_s6, 128, %s1004_s8, %s176_s10, %s904_s7, %s904_s7, %s905_s11  }
  0x33   : > { %p214_p12 = scmp.lt.s32.totalorder %s901_s17, 3  ;;  %s620_s18 = sshll.u32 %s995_s28, 1 }
  0x34   : > { %s621_s19 = sshll.u32 %s897_s16, 5  ;;  %p1264_p9 = scmp.ge.s32.totalorder %s901_s17, 1 }
  0x35   : > { %s1053_s29 = scalar_lea.hbm %s1254_s1, %s621_s19  ;;  %s201_s30 = scalar_lea.vmem [#allocation5], %s620_s18 }
  0x36   : > { %p1046_p11 = pnand %p1264_p9, %p214_p12  ;;  %s209_s4 = sshll.u32 %s201_s30, 4  ;;  %s210_s4 = int_to_ptr.vmem [resolvable:$true] %s209_s4 }
  0x37   : > { %s198_s6 = scalar_lea.sflag [#allocation6], %s995_s28  ;;  %s753_s8 = scalar_lea.hbm %s1053_s29, 32 }
  0x38   : > { %s1265_s21 = scalar_select %p1046_p11, 1, 0 }
  0x39   : > { %p754_p1 = scmp.ne.s32.totalorder %s1053_s29, %s753_s8  ;;  %s758_s7 = scalar_lea.hbm %s1254_s1, 64 }
  0x3a   : > { %p759_p2 = scmp.lt.u32.totalorder %s1053_s29, %s1254_s1  ;;  %p760_p5 = scmp.lt.u32.totalorder %s758_s7, %s753_s8 }
  0x3b   : > { %p756_p6 = pnand %p754_p1, %p725_p3  ;;  %p762_p7 = scmp.lt.u32.totalorder %s753_s8, %s1053_s29 }
  0x3c   : > { %p761_p4 = por %p760_p5, %p759_p2 }
  0x3d   : > { %p757_p13 = pneg %p756_p6 }
  0x3e   : > { %p763_p10 = por %p762_p7, %p761_p4 }
  0x40   : > { %p764_p12 = pnand %p763_p10, %p757_p13 }
  0x42   : > { %767 = shalt.err (!%p764_p12)
}
  0x43   : > { %s768_s28 = scalar_lea.vmem %s210_s4, 32  ;;  %s906_s18 = smov [#allocation5]  }
  0x44   : > { %p769_p9 = scmp.ne.s32.totalorder %s210_s4, %s768_s28  ;;  %s773_s22 = sshll.u32 %s906_s18, 4  ;;  %s774_s22 = int_to_ptr.vmem [resolvable:$false] %s773_s22 }
  0x45   : > { %s775_s23 = scalar_lea.vmem %s774_s22, 64  ;;  %p776_p8 = scmp.lt.s32.totalorder %s210_s4, %s774_s22 }
  0x46   : > { %p771_p1 = pnand %p769_p9, %p725_p3  ;;  %p777_p11 = scmp.lt.s32.totalorder %s775_s23, %s768_s28 }
  0x48   : > { %p772_p6 = pneg %p771_p1  ;;  %p778_p2 = por %p777_p11, %p776_p8 }
  0x4a   : > { %p779_p5 = pnand %p778_p2, %p772_p6 }
  0x4c   : > { %782 = shalt.err (!%p779_p5)
}
  0x4d   : > { %652 = dma.hbm_to_vmem [thread:$0]  (!%p1008_p0), %s1053_s29, 32, %s210_s4, %s198_s6  }
  0x4e   : > { %p1266_p13 = scmp.ne.s32.totalorder %s1265_s21, 0 }
  0x4f   : > { %s1078_s30 = sand.u32 (!%p1266_p13), 1, %s885_s13   ;;  %p1267_p3 = scmp.ne.s32.totalorder (!%p1266_p13), %s1260_s24, 0 }
  0x50   : > { %218 = sbr.rel (%p1266_p13) target bundleno = 193 (0xc1), region = 28  ;;  %s623_s8 = sshll.u32 (!%p1266_p13), %s1078_s30, 3 }
  0x51   : > { %s221_s10 = scalar_lea.sflag (!%p1266_p13), [#allocation3], %s1078_s30  ;;  %s224_s5 = scalar_lea.vmem (!%p1266_p13), [#allocation2], %s623_s8 }
  0x57   : > { %864 = dma.done.wait (%p1267_p3), %s221_s10, 128  }
  0x58   : > { %866 = vsyncadd (%p1267_p3), %s221_s10, 4294967168  ;;  %s624_s9 = sshll.u32 %s1078_s30, 1  ;;  %s230_s21 = scalar_lea.sflag [#allocation6], %s1078_s30 }
  0x59   : > { %s233_s29 = scalar_lea.vmem [#allocation5], %s624_s9 }
  0x5a   : > { %868 = dma.done.wait (%p1267_p3), %s230_s21, 32  }
  0x5b   : > { %870 = vsyncadd (%p1267_p3), %s230_s21, 4294967264  ;;  %s625_s4 = sshll.u32 %s1078_s30, 2  ;;  %v907_v0 = vmov 0.0   ;;  %vm277_vm0 = vcmask 1041408   ;;  %v272_v1 = vld [vmem:[%s224_s5] sm:$0x3] }
  0x5c   : > { %s1093_s6 = scalar_lea.vmem [#allocation7], %s625_s4  ;;  %s1096_s7 = scalar_lea.vmem [#allocation8], %s625_s4  ;;  %v273_v2 = vld [vmem:[%s224_s5 + $0x2] sm:$0x3]  ;;  %v274_v3 = vld [vmem:[%s224_s5 + $0x4] sm:$0x3] }
  0x5d   : > { %270 = vst [vmem:[%s1093_s6] sm:$0xf] %v907_v0  ;;  %271 = vst [vmem:[%s1096_s7] sm:$0xf] %v907_v0  ;;  %v275_v4 = vld [vmem:[%s224_s5 + $0x6] sm:$0x3]  ;;  %v278_v5 = vsel %vm277_vm0, %v272_v1, -inf  ;;  %v279_v6 = vsel %vm277_vm0, %v273_v2, -inf }
  0x5e   : > { %v280_v7 = vsel %vm277_vm0, %v274_v3, -inf  ;;  %v281_v8 = vsel %vm277_vm0, %v275_v4, -inf  ;;  %v282_v9 = vmax.f32 %v278_v5, %v279_v6  ;;  %v1103_v16 = vld [vmem:[%s233_s29] sm:$0x3]  ;;  %vm350_vm5 = vcmask 1041409   ;;  %s633_s24 = sshll.u32 %s893_s15, 6 }
  0x5f   : > { %v283_v10 = vmax.f32 %v280_v7, %v281_v8  ;;  %vm309_vm1 = vcmp.eq.s32.totalorder %v1103_v16, 0  ;;  %vm310_vm2 = vcmp.eq.s32.totalorder %v1103_v16, 1  ;;  %vm311_vm3 = vcmp.eq.s32.totalorder %v1103_v16, 2  ;;  %s458_s11 = sshll.u32 %s1093_s6, 4  ;;  %s1165_s18 = scalar_lea.hbm %s1255_s2, %s633_s24  ;;  %s1167_s11 = int_to_ptr.vmem [resolvable:$true] %s458_s11 }
  0x60   : > { %v627_v21 = vsel %vm309_vm1, 1.0, %v907_v0  ;;  %v628_v22 = vsel %vm310_vm2, 1.0, %v907_v0  ;;  %v629_v23 = vsel %vm311_vm3, 1.0, %v907_v0  ;;  %vm312_vm4 = vcmp.eq.s32.totalorder %v1103_v16, 3  ;;  %s472_s22 = sshll.u32 %s1096_s7, 4  ;;  %s439_s23 = scalar_lea.sflag [#allocation4], %s1078_s30  ;;  %s1205_s22 = int_to_ptr.vmem [resolvable:$true] %s472_s22 }
  0x61   : > { %v284_v11 = vmax.f32 %v282_v9, %v283_v10  ;;  %v396_v24 = vsel %vm277_vm0, %v627_v21, 0.0  ;;  %v403_v25 = vsel %vm277_vm0, %v628_v22, 0.0  ;;  %v410_v26 = vsel %vm277_vm0, %v629_v23, 0.0  ;;  %s783_s8 = scalar_lea.vmem %s1167_s11, 64  ;;  %p1268_p0 = scmp.ne.s32.totalorder %s1261_s25, 0 }
  0x62   : > { %v630_v27 = vsel %vm312_vm4, 1.0, %v907_v0  ;;  %v397_v29 = vrot.slane %v396_v24, 4  ;;  %v404_v32 = vrot.slane %v403_v25, 4  ;;  %v411_v33 = vrot.slane %v410_v26, 4  ;;  %p784_p8 = scmp.ne.s32.totalorder %s1167_s11, %s783_s8  ;;  %s908_s10 = smov [#allocation7]  }
  0x63   : > { %v285_v12 = vsub.f32 %v272_v1, %v284_v11  ;;  %v286_v13 = vsub.f32 %v273_v2, %v284_v11  ;;  %v287_v14 = vsub.f32 %v274_v3, %v284_v11  ;;  %v288_v15 = vsub.f32 %v275_v4, %v284_v11  ;;  %s787_s5 = sshll.u32 %s908_s10, 4  ;;  %s788_s5 = int_to_ptr.vmem [resolvable:$false] %s787_s5 }
  0x64   : > { %v417_v36 = vsel %vm277_vm0, %v630_v27, 0.0  ;;  %v398_v41 = vadd.f32 %v397_v29, %v396_v24  ;;  %v405_v43 = vadd.f32 %v404_v32, %v403_v25  ;;  %v412_v44 = vadd.f32 %v411_v33, %v410_v26  ;;  %p785_p11 = pnand %p784_p8, %p1268_p0  ;;  %s789_s9 = scalar_lea.vmem %s788_s5, 128 }
  0x65   : > { %v289_v17 = vmul.f32 1.442695, %v285_v12  ;;  %v291_v18 = vmul.f32 1.442695, %v286_v13  ;;  %v293_v19 = vmul.f32 1.442695, %v287_v14  ;;  %p790_p7 = scmp.lt.s32.totalorder %s1167_s11, %s788_s5  ;;  %p791_p10 = scmp.lt.s32.totalorder %s789_s9, %s783_s8 }
  0x66   : > { %v295_v20 = vmul.f32 1.442695, %v288_v15  ;;  %v418_v45 = vrot.slane %v417_v36, 4  ;;  %v399_v47 = vrot.slane %v398_v41, 2  ;;  %v406_v48 = vrot.slane %v405_v43, 2  ;;  %p786_p4 = pneg %p785_p11 }
  0x67   : > { %713 = vpow2.f32 %v289_v17  ;;  %v413_v49 = vrot.slane %v412_v44, 2  ;;  %vm352_vm6 = vcmask 1042434   ;;  %vm354_vm7 = vcmask 1043459   ;;  %p792_p12 = por %p791_p10, %p790_p7 }
  0x68   : > { %715 = vpow2.f32 %v291_v18  ;;  %v419_v50 = vadd.f32 %v418_v45, %v417_v36  ;;  %v400_v51 = vadd.f32 %v399_v47, %v398_v41  ;;  %v407_v52 = vadd.f32 %v406_v48, %v405_v43 }
  0x69   : > { %717 = vpow2.f32 %v293_v19  ;;  %v414_v53 = vadd.f32 %v413_v49, %v412_v44  ;;  %p793_p9 = pnand %p792_p12, %p786_p4 }
  0x6a   : > { %719 = vpow2.f32 %v295_v20  ;;  %v420_v54 = vrot.slane %v419_v50, 2  ;;  %v401_v55 = vrot.slane %v400_v51, 1  ;;  %v408_v56 = vrot.slane %v407_v52, 1 }
  0x6b   : > { %v415_v57 = vrot.slane %v414_v53, 1 }
  0x6c   : > { %v1125_v58 = vadd.f32 %v420_v54, %v419_v50  ;;  %v402_v0 = vadd.f32 %v401_v55, %v400_v51  ;;  %v1127_v1 = vadd.f32 %v408_v56, %v407_v52 }
  0x6d   : > { %v1129_v2 = vadd.f32 %v415_v57, %v414_v53 }
  0x6e   : > { %v422_v3 = vrot.slane %v1125_v58, 1 }
  0x71   : > { %v714_v28 = vpop.eup %713 }
  0x72   : > { %v716_v30 = vpop.eup %715  ;;  %v297_v31 = vsel %vm277_vm0, %v714_v28, 0.0 }
  0x73   : > { %v718_v34 = vpop.eup %717  ;;  %v298_v35 = vsel %vm277_vm0, %v716_v30, 0.0 }
  0x74   : > { %v720_v37 = vpop.eup %719  ;;  %v299_v38 = vadd.f32 %v298_v35, %v297_v31  ;;  %v300_v39 = vsel %vm277_vm0, %v718_v34, 0.0 }
  0x75   : > { %v302_v40 = vsel %vm277_vm0, %v720_v37, 0.0 }
  0x76   : > { %v301_v42 = vadd.f32 %v300_v39, %v299_v38 }
  0x78   : > { %v303_v46 = vadd.f32 %v302_v40, %v301_v42 }
  0x7a   : > { %721 = vrcp.f32 %v303_v46 }
  0x84   : > { %v722_v59 = vpop.eup %721 }
  0x85   : > { %v305_v60 = vmul.f32 %v722_v59, %v714_v28  ;;  %v306_v61 = vmul.f32 %v722_v59, %v716_v30  ;;  %v307_v62 = vmul.f32 %v722_v59, %v718_v34  ;;  %v308_v63 = vmul.f32 %v722_v59, %v720_v37 }
  0x87   : > { %v314_v4 = vsel %vm309_vm1, %v305_v60, 0.0  ;;  %v315_v5 = vsel %vm310_vm2, %v306_v61, 0.0  ;;  %v316_v6 = vsel %vm311_vm3, %v307_v62, 0.0  ;;  %v360_v7 = vsel %vm277_vm0, %v305_v60, 0.0 }
  0x88   : > { %v318_v8 = vsel %vm277_vm0, %v314_v4, 0.0  ;;  %v325_v9 = vsel %vm277_vm0, %v315_v5, 0.0  ;;  %v361_v10 = vrot.slane %v360_v7, 4  ;;  %v367_v11 = vsel %vm277_vm0, %v306_v61, 0.0  ;;  %v313_v4 = vld [vmem:[%s1093_s6] sm:$0xf] }
  0x89   : > { %v319_v12 = vrot.slane %v318_v8, 4  ;;  %v326_v13 = vrot.slane %v325_v9, 4  ;;  %v368_v14 = vrot.slane %v367_v11, 4  ;;  %v317_v15 = vsel %vm312_vm4, %v308_v63, 0.0 }
  0x8a   : > { %v332_v17 = vsel %vm277_vm0, %v316_v6, 0.0  ;;  %v339_v18 = vsel %vm277_vm0, %v317_v15, 0.0  ;;  %v362_v19 = vadd.f32 %v361_v10, %v360_v7  ;;  %v374_v20 = vsel %vm277_vm0, %v307_v62, 0.0 }
  0x8b   : > { %v320_v21 = vadd.f32 %v319_v12, %v318_v8  ;;  %v327_v22 = vadd.f32 %v326_v13, %v325_v9  ;;  %v333_v23 = vrot.slane %v332_v17, 4  ;;  %v340_v24 = vrot.slane %v339_v18, 4 }
  0x8c   : > { %v363_v25 = vrot.slane %v362_v19, 2  ;;  %v369_v26 = vadd.f32 %v368_v14, %v367_v11  ;;  %v375_v27 = vrot.slane %v374_v20, 4  ;;  %v381_v28 = vsel %vm277_vm0, %v308_v63, 0.0 }
  0x8d   : > { %v321_v16 = vrot.slane %v320_v21, 2  ;;  %v328_v29 = vrot.slane %v327_v22, 2  ;;  %v334_v30 = vadd.f32 %v333_v23, %v332_v17  ;;  %v341_v31 = vadd.f32 %v340_v24, %v339_v18 }
  0x8e   : > { %v364_v32 = vadd.f32 %v363_v25, %v362_v19  ;;  %v370_v33 = vrot.slane %v369_v26, 2  ;;  %v376_v34 = vadd.f32 %v375_v27, %v374_v20  ;;  %v382_v35 = vrot.slane %v381_v28, 4 }
  0x8f   : > { %v322_v36 = vadd.f32 %v321_v16, %v320_v21  ;;  %v329_v37 = vadd.f32 %v328_v29, %v327_v22  ;;  %v335_v38 = vrot.slane %v334_v30, 2  ;;  %v342_v39 = vrot.slane %v341_v31, 2 }
  0x90   : > { %v365_v40 = vrot.slane %v364_v32, 1  ;;  %v371_v41 = vadd.f32 %v370_v33, %v369_v26  ;;  %v377_v42 = vrot.slane %v376_v34, 2  ;;  %v383_v43 = vadd.f32 %v382_v35, %v381_v28 }
  0x91   : > { %v323_v44 = vrot.slane %v322_v36, 1  ;;  %v330_v45 = vrot.slane %v329_v37, 1  ;;  %v336_v46 = vadd.f32 %v335_v38, %v334_v30  ;;  %v343_v47 = vadd.f32 %v342_v39, %v341_v31 }
  0x92   : > { %v366_v48 = vadd.f32 %v365_v40, %v364_v32  ;;  %v372_v49 = vrot.slane %v371_v41, 1  ;;  %v378_v50 = vadd.f32 %v377_v42, %v376_v34  ;;  %v384_v51 = vrot.slane %v383_v43, 2 }
  0x93   : > { %v324_v52 = vadd.f32 %v323_v44, %v322_v36  ;;  %v331_v53 = vadd.f32 %v330_v45, %v329_v37  ;;  %v337_v54 = vrot.slane %v336_v46, 1  ;;  %v344_v55 = vrot.slane %v343_v47, 1 }
  0x94   : > { %v373_v56 = vadd.f32 %v372_v49, %v371_v41  ;;  %v379_v57 = vrot.slane %v378_v50, 1  ;;  %v385_v59 = vadd.f32 %v384_v51, %v383_v43  ;;  %v424_v60 = vadd.f32 %v402_v0, %v366_v48 }
  0x95   : > { %v338_v61 = vadd.f32 %v337_v54, %v336_v46  ;;  %v345_v62 = vadd.f32 %v344_v55, %v343_v47  ;;  %v351_v63 = vsel %vm350_vm5, %v331_v53, %v324_v52  ;;  %v423_v7 = vadd.f32 %v422_v3, %v1125_v58  ;;  %v359_v58 = vld [vmem:[%s1096_s7] sm:$0xf] }
  0x96   : > { %v380_v5 = vadd.f32 %v379_v57, %v378_v50  ;;  %v386_v6 = vrot.slane %v385_v59, 1  ;;  %v425_v8 = vadd.f32 %v1127_v1, %v373_v56 }
  0x97   : > { %v353_v0 = vsel %vm352_vm6, %v338_v61, %v351_v63 }
  0x98   : > { %v355_v9 = vsel %vm354_vm7, %v345_v62, %v353_v0  ;;  %v387_v10 = vadd.f32 %v386_v6, %v385_v59  ;;  %v426_v11 = vadd.f32 %v1129_v2, %v380_v5  ;;  %v432_v12 = vsel %vm350_vm5, %v425_v8, %v424_v60 }
  0x99   : > { %v357_v13 = vadd.f32 %v355_v9, %v313_v4 }
  0x9a   : > { %v427_v1 = vadd.f32 %v423_v7, %v387_v10  ;;  %v433_v3 = vsel %vm352_vm6, %v426_v11, %v432_v12 }
  0x9b   : > { %358 = vst [vmem:[%s1093_s6] sm:$0xf] %v357_v13 }
  0x9c   : > { %v434_v2 = vsel %vm354_vm7, %v427_v1, %v433_v3 }
  0x9d   : > { %796 = shalt.err (!%p793_p9)
}
  0x9e   : > { %s797_s21 = scalar_lea.hbm %s1165_s18, 64  ;;  %s801_s6 = scalar_lea.hbm %s1255_s2, 128 }
  0x9f   : > { %p798_p1 = scmp.ne.s32.totalorder %s1165_s18, %s797_s21  ;;  %p802_p5 = scmp.lt.u32.totalorder %s1165_s18, %s1255_s2 }
  0xa0   : > { %p803_p13 = scmp.lt.u32.totalorder %s801_s6, %s797_s21  ;;  %p805_p8 = scmp.lt.u32.totalorder %s797_s21, %s1165_s18 }
  0xa1   : > { %p799_p6 = pnand %p798_p1, %p1268_p0 }
  0xa2   : > { %p804_p3 = por %p803_p13, %p802_p5 }
  0xa3   : > { %p800_p2 = pneg %p799_p6 }
  0xa4   : > { %p806_p11 = por %p805_p8, %p804_p3 }
  0xa6   : > { %p807_p4 = pnand %p806_p11, %p800_p2 }
  0xa8   : > { %810 = shalt.err (!%p807_p4)
}
  0xa9   : > { %642 = dma.vmem_to_hbm [thread:$0]  (%p1268_p0), %s1167_s11, 64, %s1165_s18, %s439_s23   ;;  %v436_v14 = vadd.f32 %v434_v2, %v359_v58 }
  0xaa   : > { %s1201_s5 = scalar_lea.hbm %s1256_s3, %s633_s24  ;;  %s444_s9 = scalar_lea.sflag [#allocation9], %s1078_s30 }
  0xab   : > { %437 = vst [vmem:[%s1096_s7] sm:$0xf] %v436_v14  ;;  %s811_s21 = scalar_lea.vmem %s1205_s22, 64  ;;  %s909_s11 = smov [#allocation8]  }
  0xac   : > { %p812_p7 = scmp.ne.s32.totalorder %s1205_s22, %s811_s21  ;;  %s815_s15 = sshll.u32 %s909_s11, 4  ;;  %s816_s15 = int_to_ptr.vmem [resolvable:$false] %s815_s15 }
  0xad   : > { %s817_s18 = scalar_lea.vmem %s816_s15, 128  ;;  %p818_p9 = scmp.lt.s32.totalorder %s1205_s22, %s816_s15 }
  0xae   : > { %p813_p10 = pnand %p812_p7, %p1268_p0  ;;  %p819_p1 = scmp.lt.s32.totalorder %s817_s18, %s811_s21 }
  0xb0   : > { %p814_p12 = pneg %p813_p10  ;;  %p820_p6 = por %p819_p1, %p818_p9 }
  0xb2   : > { %p821_p2 = pnand %p820_p6, %p814_p12 }
  0xb4   : > { %824 = shalt.err (!%p821_p2)
}
  0xb5   : > { %s825_s30 = scalar_lea.hbm %s1201_s5, 64  ;;  %s829_s23 = scalar_lea.hbm %s1256_s3, 128 }
  0xb6   : > { %p826_p5 = scmp.ne.s32.totalorder %s1201_s5, %s825_s30  ;;  %p830_p8 = scmp.lt.u32.totalorder %s1201_s5, %s1256_s3 }
  0xb7   : > { %p831_p11 = scmp.lt.u32.totalorder %s829_s23, %s825_s30  ;;  %p833_p7 = scmp.lt.u32.totalorder %s825_s30, %s1201_s5 }
  0xb8   : > { %p827_p13 = pnand %p826_p5, %p1268_p0 }
  0xb9   : > { %p832_p4 = por %p831_p11, %p830_p8 }
  0xba   : > { %p828_p3 = pneg %p827_p13 }
  0xbb   : > { %p834_p10 = por %p833_p7, %p832_p4 }
  0xbd   : > { %p835_p12 = pnand %p834_p10, %p828_p3 }
  0xbf   : > { %838 = shalt.err (!%p835_p12)
}
  0xc0   : > { %643 = dma.vmem_to_hbm [thread:$0]  (%p1268_p0), %s1205_s22, 64, %s1201_s5, %s444_s9  }
  0xc1 PF: > { %s484_s6 = sand.u32 1, %s881_s12   ;;  %p1269_p9 = scmp.ne.s32.totalorder %s1262_s27, 0 }
  0xc2   : > { %p1270_p1 = scmp.ge.s32.totalorder %s901_s17, 2  ;;  %s485_s19 = scalar_lea.sflag [#allocation4], %s484_s6 }
  0xc4   : > { %p654_p6 = pnand %p1270_p1, %p1269_p9 }
  0xc6   : > { %872 = dma.done.wait (!%p654_p6), %s485_s19, 64  }
  0xc7   : > { %874 = vsyncadd (!%p654_p6), %s485_s19, 4294967232  ;;  %s494_s28 = scalar_lea.sflag [#allocation9], %s484_s6 }
  0xc8   : > { %876 = dma.done.wait (!%p654_p6), %s494_s28, 64  }
  0xc9   : > { %878 = vsyncadd (!%p654_p6), %s494_s28, 4294967232  ;;  %s26_s17 = sadd.s32 1, %s901_s17   ;;  %s1271_s12 = smov %s885_s13 }
  0xca   : > { %p23_p2 = scmp.ge.s32.totalorder %s26_s17, 4   ;;  %s1272_s13 = smov %s889_s14 }
  0xcb   : > { %s1273_s14 = smov %s986_s26  ;;  %s1274_s15 = smov %s897_s16 }
  0xcc   : > { %s1275_s16 = smov %s1277_s20  ;;  %25 = sbr.rel (!%p23_p2) target bundleno = 10 (0xa), region = 107 }
  0xd3   :  { %499 = vsyncpa [#allocation3], 1 }
  0xd4   :  { %501 = vsyncpa [#allocation3 + $0x1], 1 }
  0xd5   :  { %502 = vsyncpa [#allocation6], 1 }
  0xd6   :  { %504 = vsyncpa [#allocation6 + $0x1], 1 }
  0xd7   :  { %505 = vsyncpa [#allocation4], 1 }
  0xd8   :  { %507 = vsyncpa [#allocation4 + $0x1], 1 }
  0xd9   :  { %508 = vsyncpa [#allocation9], 1 }
  0xda   :  { %510 = vsyncpa [#allocation9 + $0x1], 1 }

</bundles_post_ra>
